<compile_context>
chip_gen: v5e
topology: v5e:2x2
jax: 0.10.0
libtpu: 0.0.40
codegen_flags: <defaults>
</compile_context>

<pallas_src>
import jax
import jax.numpy as jnp
from jax import lax
from jax.experimental import pallas as pl
from jax.experimental.pallas import tpu as pltpu


# --------------------------------------------------------------------------- #
# Kernels
# --------------------------------------------------------------------------- #
def _agmm_kernel_fused_k(x_ref, w_ref, o_ref):
    """Full-K panels resident in VMEM: one MXU sweep per (tm, tn) output tile.

    x_ref: (tm, K), w_ref: (tn, K)  ->  o_ref: (tm, tn), contracting last axes.
    """
    o_ref[...] = lax.dot_general(
        x_ref[...],
        w_ref[...],
        dimension_numbers=(((1,), (1,)), ((), ())),
        preferred_element_type=jnp.float32,
    ).astype(o_ref.dtype)


def _agmm_kernel_tiled_k(x_ref, w_ref, o_ref, acc_ref):
    """K-tiled fallback: f32 VMEM accumulator, K is the innermost grid axis."""

    @pl.when(pl.program_id(2) == 0)
    def _():
        acc_ref[...] = jnp.zeros_like(acc_ref)

    acc_ref[...] += lax.dot_general(
        x_ref[...],
        w_ref[...],
        dimension_numbers=(((1,), (1,)), ((), ())),
        preferred_element_type=jnp.float32,
    )

    @pl.when(pl.program_id(2) == pl.num_programs(2) - 1)
    def _():
        o_ref[...] = acc_ref[...].astype(o_ref.dtype)


# --------------------------------------------------------------------------- #
# Wrapper
# --------------------------------------------------------------------------- #
def _round_up(x: int, m: int) -> int:
    return (x + m - 1) // m * m


def _sublane_multiple(dtype) -> int:
    # f32 -> 8, bf16 -> 16, int8/fp8 -> 32
    return max(8, 32 // jnp.dtype(dtype).itemsize)


def _vmem_capacity_and_budget() -> tuple[int, int]:
    try:
        cap = int(pltpu.get_tpu_info().vmem_capacity_bytes)
    except Exception:
        cap = 64 * 1024 * 1024  # conservative: v7x per-TensorCore VMEM
    return cap, (cap * 3) // 4  # ~25% headroom for Mosaic internal scratch


def agmm_forward(
    hidden_states: jax.Array,
    weight: jax.Array,
    *,
    tm: int | None = None,
    tn: int | None = None,
    tk: int | None = None,
    compute_dtype=jnp.bfloat16,
) -> jax.Array:
    """hidden_states: (..., H), weight: (H_out, H_in) -> (M, H_out) = x @ weight.T."""
    n_out, k_in = weight.shape
    out_dtype = hidden_states.dtype

    # view + all_gather (identity at TP world_size == 1).
    x = hidden_states.reshape(-1, k_in)
    m = x.shape[0]

    if compute_dtype is not None and x.dtype != compute_dtype:
        x = x.astype(compute_dtype)
    w = weight
    if compute_dtype is not None and w.dtype != compute_dtype:
        w = w.astype(compute_dtype)

    # Lane-align the hidden dims (only triggers for tiny H, e.g. the H=16 demo);
    # zero K-padding does not change the result and keeps output stores dense.
    k_pad = _round_up(k_in, 128)
    n_pad = _round_up(n_out, 128)
    if k_pad != k_in:
        x = jnp.pad(x, ((0, 0), (0, k_pad - k_in)))
    if n_pad != n_out or k_pad != k_in:
        w = jnp.pad(w, ((0, n_pad - n_out), (0, k_pad - k_in)))

    bpe_in = jnp.dtype(x.dtype).itemsize
    bpe_out = jnp.dtype(out_dtype).itemsize
    cap, budget = _vmem_capacity_and_budget()

    # Default output tile: 512 everywhere, 1024 on 128-MiB-VMEM chips (v5e/v6e).
    default_tile = 1024 if cap >= 128 * 1024 * 1024 else 512
    tm = tm if tm is not None else default_tile
    tn = tn if tn is not None else default_tile

    sub = _sublane_multiple(x.dtype)
    tm_eff = min(tm, _round_up(m, sub))
    tn_eff = min(tn, n_pad)

    # Keep both v7x TensorCores busy when the M/N grid would collapse to 1x1.
    if pl.cdiv(m, tm_eff) * pl.cdiv(n_pad, tn_eff) < 2 and n_pad >= 256:
        tn_eff = max(128, _round_up(n_pad // 2, 128))

    grid_m = pl.cdiv(m, tm_eff)
    grid_n = pl.cdiv(n_pad, tn_eff)

    def _panel_bytes(tk_, with_acc):
        s = 2 * (tm_eff + tn_eff) * tk_ * bpe_in + 2 * tm_eff * tn_eff * bpe_out
        if with_acc:
            s += tm_eff * tn_eff * 4
        return s

    # Choose tk: drop the K grid axis entirely when the full-K panels fit VMEM.
    if tk is None:
        if _panel_bytes(k_pad, False) <= budget:
            tk_eff = k_pad
        else:
            tk_eff = 128
            for cand in (2048, 1024, 512, 256):
                if k_pad % cand == 0 and _panel_bytes(cand, True) <= budget:
                    tk_eff = cand
                    break
    else:
        tk_eff = min(tk, k_pad)
        if k_pad % tk_eff != 0:
            tk_eff = k_pad  # K tiles must divide K exactly (reduction axis)

    cost = pl.CostEstimate(
        flops=2 * m * n_pad * k_pad,
        transcendentals=0,
        bytes_accessed=(m * k_pad + n_pad * k_pad) * bpe_in + m * n_pad * bpe_out,
    )
    out_shape = jax.ShapeDtypeStruct((m, n_pad), out_dtype)

    if tk_eff == k_pad:
        out = pl.pallas_call(
            _agmm_kernel_fused_k,
            out_shape=out_shape,
            grid_spec=pltpu.PrefetchScalarGridSpec(
                num_scalar_prefetch=0,
                grid=(grid_m, grid_n),
                in_specs=[
                    pl.BlockSpec((tm_eff, k_pad), lambda i, j: (i, 0)),  # activations
                    pl.BlockSpec((tn_eff, k_pad), lambda i, j: (j, 0)),  # weight (H_out, H_in)
                ],
                out_specs=pl.BlockSpec((tm_eff, tn_eff), lambda i, j: (i, j)),
            ),
            cost_estimate=cost,
            compiler_params=pltpu.CompilerParams(
                dimension_semantics=("parallel", "parallel"),
                vmem_limit_bytes=budget,
            ),
        )(x, w)
    else:
        grid_k = k_pad // tk_eff
        out = pl.pallas_call(
            _agmm_kernel_tiled_k,
            out_shape=out_shape,
            grid_spec=pltpu.PrefetchScalarGridSpec(
                num_scalar_prefetch=0,
                grid=(grid_m, grid_n, grid_k),
                in_specs=[
                    pl.BlockSpec((tm_eff, tk_eff), lambda i, j, k: (i, k)),
                    pl.BlockSpec((tn_eff, tk_eff), lambda i, j, k: (j, k)),
                ],
                out_specs=pl.BlockSpec((tm_eff, tn_eff), lambda i, j, k: (i, j)),
                scratch_shapes=[pltpu.VMEM((tm_eff, tn_eff), jnp.float32)],
            ),
            cost_estimate=cost,
            compiler_params=pltpu.CompilerParams(
                dimension_semantics=("parallel", "parallel", "arbitrary"),
                vmem_limit_bytes=budget,
            ),
        )(x, w)

    if n_pad != n_out:
        out = out[:, :n_out]
    return out


# --------------------------------------------------------------------------- #
# Demo / self-test
# --------------------------------------------------------------------------- #
if __name__ == "__main__":
    key = jax.random.PRNGKey(0)
    k_x, k_w, k_x2, k_w2 = jax.random.split(key, 4)

    def _ref(hs, w):
        # Reference matching the kernel's bf16-multiply / f32-accumulate path.
        x32 = hs.reshape(-1, w.shape[1]).astype(jnp.bfloat16).astype(jnp.float32)
        w32 = w.astype(jnp.bfloat16).astype(jnp.float32)
        return x32 @ w32.T

    # --- Module's shapes: hidden_size=16, batch=2, seq=8 (M = 16 rows) ---
    hidden_size = 16
    batch, seq = 2, 8
    hidden_states = jax.random.normal(k_x, (batch, seq, hidden_size), dtype=jnp.float32)
    # torch.nn.init.normal_(weight, std=0.02)
    weight = 0.02 * jax.random.normal(k_w, (hidden_size, hidden_size), dtype=jnp.float32)

    out = jax.block_until_ready(agmm_forward(hidden_states, weight))
    assert out.shape == (batch * seq, hidden_size)
    assert out.dtype == jnp.float32
    assert jnp.allclose(out, _ref(hidden_states, weight), atol=1e-3, rtol=1e-2)

    # --- Larger check: ragged M (M=150, no jnp.pad), split-N grid, fused-K path ---
    hidden_size2 = 256
    batch2, seq2 = 2, 75  # M = 150
    hs2 = jax.random.normal(k_x2, (batch2, seq2, hidden_size2), dtype=jnp.float32)
    w2 = 0.02 * jax.random.normal(k_w2, (hidden_size2, hidden_size2), dtype=jnp.float32)

    out2 = jax.block_until_ready(agmm_forward(hs2, w2))
    assert out2.shape == (batch2 * seq2, hidden_size2)
    assert jnp.allclose(out2, _ref(hs2, w2), atol=1e-3, rtol=1e-2)

    # --- Force the K-tiled accumulator path (tk < K) on the same inputs ---
    out3 = jax.block_until_ready(agmm_forward(hs2, w2, tk=128))
    assert jnp.allclose(out3, _ref(hs2, w2), atol=1e-3, rtol=1e-2)

    print("KERNEL_OK")
</pallas_src>

<mosaic_0001>
module attributes {stable_mosaic.version = 11 : i64} {
  func.func @_agmm_kernel_fused_k(%arg0: i32, %arg1: i32, %arg2: memref<16x128xbf16, #tpu.memory_space<vmem>>, %arg3: memref<128x128xbf16, #tpu.memory_space<vmem>>, %arg4: memref<16x128xf32, #tpu.memory_space<vmem>>) attributes {dimension_semantics = [#tpu.dimension_semantics<parallel>, #tpu.dimension_semantics<parallel>], iteration_bounds = array<i64: 1, 1>, scalar_prefetch = 0 : i64, scratch_operands = 0 : i64, tpu.core_type = #tpu.core_type<tc>, window_params = [{transform_indices = @transform_0, window_bounds = array<i64: 16, 128>}, {transform_indices = @transform_1, window_bounds = array<i64: 128, 128>}, {transform_indices = @transform_2, window_bounds = array<i64: 16, 128>}]} {
    %c0 = arith.constant 0 : index
    %c0_0 = arith.constant 0 : index
    %0 = vector.load %arg2[%c0, %c0_0] : memref<16x128xbf16, #tpu.memory_space<vmem>>, vector<16x128xbf16>
    %c0_1 = arith.constant 0 : index
    %c0_2 = arith.constant 0 : index
    %1 = vector.load %arg3[%c0_1, %c0_2] : memref<128x128xbf16, #tpu.memory_space<vmem>>, vector<128x128xbf16>
    %cst = arith.constant dense<0.000000e+00> : vector<16x128xf32>
    %2 = tpu.matmul %0, %1, %cst {dimension_numbers = #tpu.dot_dimension_numbers<[1], [1], [0], [0], [0, 0, 1, 0], [], []>} : vector<16x128xbf16>, vector<128x128xbf16>, vector<16x128xf32> -> vector<16x128xf32>
    %c0_3 = arith.constant 0 : index
    %c0_4 = arith.constant 0 : index
    %3 = vector.load %arg4[%c0_3, %c0_4] : memref<16x128xf32, #tpu.memory_space<vmem>>, vector<16x128xf32>
    tpu.vector_store %arg4[%c0_3, %c0_4], %2 {strides = array<i32>} : memref<16x128xf32, #tpu.memory_space<vmem>>, vector<16x128xf32>,
    return
  }
  func.func @transform_0(%arg0: i32, %arg1: i32) -> (i32, i32) {
    %c0_i32 = arith.constant 0 : i32
    %c0_i32_0 = arith.constant 0 : i32
    return %arg0, %c0_i32 : i32, i32
  }
  func.func @transform_1(%arg0: i32, %arg1: i32) -> (i32, i32) {
    %c0_i32 = arith.constant 0 : i32
    %c0_i32_0 = arith.constant 0 : i32
    return %arg1, %c0_i32 : i32, i32
  }
  func.func @transform_2(%arg0: i32, %arg1: i32) -> (i32, i32) {
    %c0_i32 = arith.constant 0 : i32
    return %arg0, %arg1 : i32, i32
  }
}

</mosaic_0001>

<bundles_post_ra>
// kernel: tpu_custom_call.1
= control target key start
LH: loop header
LB: loop body
LE: loop exit
PB: predicated region body
PF: predicated region fallthrough
CT: control target
= control target key end

     0   :  { %7 = vsyncpa [#allocation3], 0  ;;  %s313_s0 = inlined_call_operand.hbm [shape: bf16[16,128], index: 0, kind: input, shape index: {}]   ;;  %s314_s1 = inlined_call_operand.hbm [shape: bf16[128,128], index: 1, kind: input, shape index: {}]   ;;  %s315_s2 = inlined_call_operand.hbm [shape: f32[16,128], index: 2, kind: output, shape index: {}]  }
   0x1   :  { %8 = vsyncpa [#allocation6], 0 }
   0x2   :  { %9 = vsyncpa [#allocation4], 0  ;;  %s14_s11 = sshll.u32 %s313_s0, 4  ;;  %s282_s12 = smov [#allocation2]   ;;  %s15_s11 = int_to_ptr.hbm [resolvable:$true] %s14_s11 }
   0x3   :  { %s16_s13 = sshll.u32 %s282_s12, 4  ;;  %s27_s16 = sshll.u32 %s314_s1, 4  ;;  %s17_s13 = int_to_ptr.vmem [resolvable:$true] %s16_s13  ;;  %s28_s16 = int_to_ptr.hbm [resolvable:$true] %s27_s16 }
   0x4   :  { %s283_s17 = smov 64   ;;  %s284_s18 = smov 4  }
   0x5   :  { %22 = dma.hbm_to_vmem [thread:$0]  %s15_s11, 128, %s17_s13, [#allocation3], %s283_s17, %s283_s17, %s284_s18  }
   0x6   :  { %s285_s19 = smov [#allocation5]  }
   0x7   :  { %s29_s20 = sshll.u32 %s285_s19, 4  ;;  %s30_s20 = int_to_ptr.vmem [resolvable:$true] %s29_s20 }
   0x8   :  { %35 = dma.hbm_to_vmem [thread:$0]  %s28_s16, 1024, %s30_s20, [#allocation6], %s283_s17, %s283_s17, %s284_s18  }
   0x9   :  { %276 = dma.done.wait [#allocation3], 128  }
   0xa   :  { %277 = vsyncadd [#allocation3], 4294967168 }
   0xb   :  { %278 = dma.done.wait [#allocation6], 1024  }
   0xc   :  { %279 = vsyncadd [#allocation6], 4294966272  ;;  %v196_v0 = vld [vmem:[#allocation5 + $0x38] sm:$0xff]  ;;  %v195_v1 = vld [vmem:[#allocation5 + $0x30] sm:$0xff]  ;;  %s286_s0 = smov [#allocation7]   ;;  %s138_s23 = sshll.u32 %s315_s2, 4  ;;  %s139_s23 = int_to_ptr.hbm [resolvable:$true] %s138_s23 }
   0xd   :  { %116 = vmatpush.bf16.xpose.msra.mxu0 %v196_v0  ;;  %v194_v2 = vld [vmem:[#allocation5 + $0x28] sm:$0xff]  ;;  %v193_v3 = vld [vmem:[#allocation5 + $0x20] sm:$0xff]  ;;  %v192_v4 = vld [vmem:[#allocation5 + $0x18] sm:$0xff]  ;;  %s136_s1 = sshll.u32 %s286_s0, 4  ;;  %s287_s24 = smov 128   ;;  %s137_s1 = int_to_ptr.vmem [resolvable:$true] %s136_s1 }
   0xe   :  { %v191_v5 = vld [vmem:[#allocation5 + $0x10] sm:$0xff]  ;;  %v190_v6 = vld [vmem:[#allocation5 + $0x8] sm:$0xff]  ;;  %v189_v7 = vld [vmem:[#allocation5] sm:$0xff]  ;;  %s288_s25 = smov 8  }
   0xf   :  { %v188_v8 = vld [vmem:[#allocation2] sm:$0xff] }
  0x15   :  { %117 = vmatpush.bf16.xpose.msra.mxu0 %v195_v1 }
  0x1d   :  { %118 = vmatpush.bf16.xpose.msra.mxu0 %v194_v2 }
  0x25   :  { %119 = vmatpush.bf16.xpose.msra.mxu0 %v193_v3 }
  0x2d   :  { %120 = vmatpush.bf16.xpose.msra.mxu0 %v192_v4 }
  0x35   :  { %121 = vmatpush.bf16.xpose.msra.mxu0 %v191_v5 }
  0x3d   :  { %122 = vmatpush.bf16.xpose.msra.mxu0 %v190_v6 }
  0x45   :  { %123 = vmatpush.bf16.xpose.msra.mxu0 %v189_v7 }
  0x4c   :  { %124 = vmatmul.bf16.vlgmr.msra.gmra.mxu0 %v188_v8 }
  0xc9   :  { %v125_v9 = vpop.f32.mrf.mxu0 }
  0xca   :  { %130 = vst [vmem:[#allocation7] sm:$0xff] %v125_v9 }
  0xd1   :  { %v127_v10 = vpop.f32.mrf.mxu0 }
  0xd2   :  { %131 = vst [vmem:[#allocation7 + $0x8] sm:$0xff] %v127_v10 }
  0xd3   :  { %144 = dma.vmem_to_hbm [thread:$0]  %s137_s1, 256, %s139_s23, [#allocation4], %s287_s24, %s287_s24, %s288_s25  }
  0xd4   :  { %280 = dma.done.wait [#allocation4], 256  }
  0xd5   :  { %281 = vsyncadd [#allocation4], 4294967040 }
  0xd6   :  { %149 = vsyncpa [#allocation3], 1 }
  0xd7   :  { %150 = vsyncpa [#allocation6], 1 }
  0xd8   :  { %151 = vsyncpa [#allocation4], 1 }

</bundles_post_ra>
